<compile_context>
chip_gen: v7x
topology: tpu7x:2x2x1
jax: 0.10.0
libtpu: 0.0.40
codegen_flags: <defaults>
</compile_context>

<pallas_src>
import functools

import jax
import jax.numpy as jnp
from jax.experimental import pallas as pl
from jax.experimental.pallas import tpu as pltpu

_SUBLANE = 8
_TARGET_BLOCK_BYTES = 2 * 1024 * 1024  # ~2 MiB/block; x2 bufs x2 arrays << scoped VMEM


# ---------------------------------------------------------------------------
# Backward Pallas kernel: out = (-alpha) * g   (elementwise, mem-bound)
# ---------------------------------------------------------------------------
def _make_neg_scale_kernel(neg_alpha):
    def kernel(g_ref, o_ref):
        g = g_ref[...]
        o_ref[...] = (neg_alpha * g.astype(jnp.float32)).astype(o_ref.dtype)

    return kernel


def _flatten_lane_dense(a):
    """Flatten to 2-D with the last dim a large multiple of 128 when possible."""
    shape = a.shape
    n = a.size
    for w in (2048, 1024, 512, 256, 128):
        if n >= w and n % w == 0:
            return a.reshape(n // w, w), shape
    if a.ndim >= 2 and shape[-1] > 0:
        return a.reshape(-1, shape[-1]), shape
    return a.reshape(1, -1), shape  # 0-d / 1-d / odd-size fallback


def _pick_row_tile(rows, cols, itemsize):
    """Largest row tile (multiple of 8) near the ~2 MiB target; prefer exact divisors."""
    bytes_per_row = max(1, cols * itemsize)
    tile_r = max(_SUBLANE, min(rows, _TARGET_BLOCK_BYTES // bytes_per_row))
    tile_r = max(_SUBLANE, (tile_r // _SUBLANE) * _SUBLANE)
    if tile_r >= rows:
        return rows  # single block == full array dims (always legal)
    # Prefer a tile that evenly divides `rows` (no masked partial last block).
    for t in range(tile_r, _SUBLANE - 1, -_SUBLANE):
        if rows % t == 0:
            return t
    return tile_r  # fall back: Pallas handles the ragged last block correctly


def _neg_scale_2d(g2d, alpha):
    rows, cols = g2d.shape
    neg_alpha = -float(alpha)
    tile_r = _pick_row_tile(rows, cols, g2d.dtype.itemsize)
    grid = (pl.cdiv(rows, tile_r),)

    return pl.pallas_call(
        _make_neg_scale_kernel(neg_alpha),
        out_shape=jax.ShapeDtypeStruct((rows, cols), g2d.dtype),
        grid_spec=pltpu.PrefetchScalarGridSpec(
            num_scalar_prefetch=0,
            grid=grid,
            in_specs=[pl.BlockSpec((tile_r, cols), lambda i: (i, 0))],
            out_specs=pl.BlockSpec((tile_r, cols), lambda i: (i, 0)),
        ),
        compiler_params=pltpu.CompilerParams(
            # Independent row blocks -> shard across TensorCores (v7x megacore).
            dimension_semantics=("parallel",),
            # Explicit headroom for double-buffered in/out blocks; safe on
            # v5e/v6e (128 MiB VMEM) and v7x (64 MiB VMEM).
            vmem_limit_bytes=32 << 20,
        ),
    )(g2d)


# ---------------------------------------------------------------------------
# GradientReversal: identity fwd (no kernel), Pallas (-alpha * g) bwd
# ---------------------------------------------------------------------------
@functools.partial(jax.custom_vjp, nondiff_argnums=(1,))
def gradient_reversal(x, alpha):
    # Forward is a pure identity — no kernel, no HBM traffic.
    return x


def _grl_fwd(x, alpha):
    return x, None


def _grl_bwd(alpha, _, g):
    g2d, shape = _flatten_lane_dense(g)
    dx2d = _neg_scale_2d(g2d, alpha)
    return (dx2d.reshape(shape),)


gradient_reversal.defvjp(_grl_fwd, _grl_bwd)


class GradientReversal:
    """JAX/Pallas port of the PyTorch GradientReversal module."""

    def __init__(self, alpha):
        # alpha is a fixed, non-trainable scalar (nondiff argument).
        self.alpha = float(alpha)

    def __call__(self, x):
        return gradient_reversal(x, self.alpha)


# ---------------------------------------------------------------------------
# Demo / smoke test
# ---------------------------------------------------------------------------
if __name__ == "__main__":
    key = jax.random.PRNGKey(0)
    batch, channels, h, w = 2, 4, 16, 16
    x = jax.random.normal(key, (batch, channels, h, w), dtype=jnp.float32)

    alpha = 0.5
    module = GradientReversal(alpha)

    # Forward: identity (no kernel involved).
    y = jax.block_until_ready(module(x))
    assert y.shape == x.shape and y.dtype == x.dtype
    assert jnp.allclose(y, x), "forward must be identity"

    # Backward: grad = -alpha * upstream_grad (upstream grad = 2.0 everywhere).
    def loss_fn(xx):
        return jnp.sum(module(xx) * 2.0)

    grad = jax.block_until_ready(jax.grad(loss_fn)(x))
    expected = jnp.full_like(x, -alpha * 2.0)
    assert jnp.allclose(grad, expected, atol=1e-6), "backward must be -alpha*g"

    # bf16 path (checks explicit dtype cast inside the kernel).
    xb = x.astype(jnp.bfloat16)

    def loss_bf16(xx):
        return jnp.sum(module(xx).astype(jnp.float32) * 2.0)

    grad_b = jax.block_until_ready(jax.grad(loss_bf16)(xb))
    assert grad_b.dtype == jnp.bfloat16
    assert jnp.allclose(
        grad_b.astype(jnp.float32), jnp.full(x.shape, -alpha * 2.0), atol=1e-2
    )

    # Odd-shaped input exercises the ragged / fallback flattening path.
    xo = jax.random.normal(key, (3, 5, 7), dtype=jnp.float32)
    grad_o = jax.block_until_ready(
        jax.grad(lambda xx: jnp.sum(module(xx) * 3.0))(xo)
    )
    assert jnp.allclose(grad_o, jnp.full_like(xo, -alpha * 3.0), atol=1e-6)

    print("KERNEL_OK")
</pallas_src>

<mosaic_0001>
module attributes {stable_mosaic.version = 11 : i64} {
  func.func @kernel(%arg0: i32, %arg1: memref<1x2048xf32, #tpu.memory_space<vmem>>, %arg2: memref<1x2048xf32, #tpu.memory_space<vmem>>) attributes {dimension_semantics = [#tpu.dimension_semantics<parallel>], iteration_bounds = array<i64: 1>, scalar_prefetch = 0 : i64, scratch_operands = 0 : i64, tpu.core_type = #tpu.core_type<tc>, window_params = [{transform_indices = @transform_0, window_bounds = array<i64: 1, 2048>}, {transform_indices = @transform_1, window_bounds = array<i64: 1, 2048>}]} {
    %c0 = arith.constant 0 : index
    %c0_0 = arith.constant 0 : index
    %0 = vector.load %arg1[%c0, %c0_0] : memref<1x2048xf32, #tpu.memory_space<vmem>>, vector<1x2048xf32>
    %cst = arith.constant -5.000000e-01 : f32
    %1 = vector.broadcast %cst : f32 to vector<1x2048xf32>
    %2 = arith.mulf %1, %0 : vector<1x2048xf32>
    %c0_1 = arith.constant 0 : index
    %c0_2 = arith.constant 0 : index
    %3 = vector.load %arg2[%c0_1, %c0_2] : memref<1x2048xf32, #tpu.memory_space<vmem>>, vector<1x2048xf32>
    tpu.vector_store %arg2[%c0_1, %c0_2], %2 {strides = array<i32>} : memref<1x2048xf32, #tpu.memory_space<vmem>>, vector<1x2048xf32>,
    return
  }
  func.func @transform_0(%arg0: i32) -> (i32, i32) {
    %c0_i32 = arith.constant 0 : i32
    %c0_i32_0 = arith.constant 0 : i32
    return %arg0, %c0_i32 : i32, i32
  }
  func.func @transform_1(%arg0: i32) -> (i32, i32) {
    %c0_i32 = arith.constant 0 : i32
    %c0_i32_0 = arith.constant 0 : i32
    return %arg0, %c0_i32 : i32, i32
  }
}

</mosaic_0001>

<bundles_post_ra>
// kernel: tpu_custom_call.1
= control target key start
LH: loop header
LB: loop body
LE: loop exit
PB: predicated region body
PF: predicated region fallthrough
CT: control target
= control target key end

     0   :  { %6 = vsyncpa [#allocation3], 0  ;;  %s128_s0 = inlined_call_operand.hbm [shape: f32[1,2048], index: 0, kind: input, shape index: {}]   ;;  %s129_s1 = inlined_call_operand.hbm [shape: f32[1,2048], index: 1, kind: output, shape index: {}]  }
   0x1   :  { %7 = vsyncpa [#allocation4], 0  ;;  %s92_s6 = smov [#allocation2]   ;;  %s44_s10 = scalar_lea.hbm %s128_s0, 256 }
   0x2   :  { %s14_s7 = sshll.u32 %s92_s6, 4  ;;  %p45_p0 = scmp.ne.s32.totalorder %s128_s0, %s44_s10  ;;  %s15_s7 = int_to_ptr.vmem [resolvable:$true] %s14_s7 }
   0x3   :  { %p48_p1 = scmp.lt.u32.totalorder %s44_s10, %s128_s0 }
   0x5   :  { %p50_p2 = pnand %p48_p1, %p45_p0 }
   0x7   :  { %53 = shalt.err (!%p50_p2)
}
   0x8   :  { %s54_s15 = scalar_lea.vmem %s15_s7, 256  ;;  %p59_p4 = scmp.lt.s32.totalorder %s15_s7, %s15_s7 }
   0x9   :  { %p55_p3 = scmp.ne.s32.totalorder %s15_s7, %s54_s15  ;;  %p60_p5 = scmp.lt.s32.totalorder %s54_s15, %s54_s15 }
   0xb   :  { %p61_p6 = por %p60_p5, %p59_p4 }
   0xd   :  { %p62_p7 = pnand %p61_p6, %p55_p3 }
   0xf   :  { %65 = shalt.err (!%p62_p7)
}
  0x10   :  { %17 = dma.hbm_to_vmem [thread:$0]  %s128_s0, 256, %s15_s7, [#allocation3]  }
  0x11   :  { %88 = dma.done.wait [#allocation3], 256  }
  0x12   :  { %89 = vsyncadd [#allocation3], 4294967040  ;;  %s93_s18 = smov [#allocation5]   ;;  %v21_v0 = vld [vmem:[#allocation2] sm:$0xff]  ;;  %v22_v1 = vld [vmem:[#allocation2 + $0x8] sm:$0xff] }
  0x13   :  { %s33_s19 = sshll.u32 %s93_s18, 4  ;;  %v23_v2 = vmul.f32 -0.5, %v21_v0  ;;  %v24_v3 = vmul.f32 -0.5, %v22_v1  ;;  %s34_s19 = int_to_ptr.vmem [resolvable:$true] %s33_s19 }
  0x14   :  { %s66_s20 = scalar_lea.vmem %s34_s19, 256  ;;  %p71_p9 = scmp.lt.s32.totalorder %s34_s19, %s34_s19 }
  0x15   :  { %25 = vst [vmem:[#allocation5] sm:$0xff] %v23_v2  ;;  %26 = vst [vmem:[#allocation5 + $0x8] sm:$0xff] %v24_v3  ;;  %p67_p8 = scmp.ne.s32.totalorder %s34_s19, %s66_s20  ;;  %p72_p10 = scmp.lt.s32.totalorder %s66_s20, %s66_s20 }
  0x17   :  { %p73_p11 = por %p72_p10, %p71_p9 }
  0x19   :  { %p74_p12 = pnand %p73_p11, %p67_p8 }
  0x1b   :  { %77 = shalt.err (!%p74_p12)
}
  0x1c   :  { %s78_s22 = scalar_lea.hbm %s129_s1, 256 }
  0x1d   :  { %p79_p13 = scmp.ne.s32.totalorder %s129_s1, %s78_s22  ;;  %p82_p0 = scmp.lt.u32.totalorder %s78_s22, %s129_s1 }
  0x1f   :  { %p84_p1 = pnand %p82_p0, %p79_p13 }
  0x21   :  { %87 = shalt.err (!%p84_p1)
}
  0x22   :  { %36 = dma.vmem_to_hbm [thread:$0]  %s34_s19, 256, %s129_s1, [#allocation4]  }
  0x23   :  { %90 = dma.done.wait [#allocation4], 256  }
  0x24   :  { %91 = vsyncadd [#allocation4], 4294967040 }
  0x25   :  { %40 = vsyncpa [#allocation3], 1 }
  0x26   :  { %41 = vsyncpa [#allocation4], 1 }

</bundles_post_ra>
